<compile_context>
chip_gen: v7x
topology: tpu7x:2x2x1
jax: 0.10.0
libtpu: 0.0.40
codegen_flags: <defaults>
</compile_context>

<pallas_src>
import functools

import jax
import jax.numpy as jnp
from jax.experimental import pallas as pl
from jax.experimental.pallas import tpu as pltpu


_MASK_VALUE = -1e30    # large finite negative (avoids -inf -> NaN corner cases)


def _round_up(x, m):
    return ((x + m - 1) // m) * m


def _pick_tiles(seq_len, tq_target, tk_target):
    """Pick (tq, tk, padded_len).

    Tiles are multiples of 16 (bf16 sublane packing) and both divide padded_len;
    awkward lengths are padded (and tail-masked) instead of falling back to tiny
    8-row tiles or a full-extent tile whose (L, L) score temporary could blow VMEM.
    """
    if seq_len <= min(tq_target, tk_target):
        t = _round_up(max(seq_len, 1), 16)
        return t, t, t
    lp = _round_up(seq_len, 128)

    def best(target):
        target = max(128, (min(target, lp) // 128) * 128)
        for t in range(target, 127, -128):
            if lp % t == 0:
                return t
        return 128

    return best(tq_target), best(tk_target), lp


def _vmem_limit_bytes(tq, tk, d_model, d_k, d_v):
    """Scoped-VMEM limit derived from the actual block/scratch footprint."""
    dmax = max(d_k, d_v)
    in_blocks = 2 * 4 * (tq * d_model + 2 * tk * d_model)       # q,k,v f32, double-buffered
    w_blocks = 2 * (3 * d_model * dmax * 2 + 3 * dmax * 4)      # weights bf16 + bias f32
    out_block = 2 * 4 * tq * d_v
    scratch = tq * d_k * 2 + 2 * tq * 4 + tq * d_v * 4
    temps = 6 * tq * tk * 4                                     # s / p / exp temporaries
    total = in_blocks + w_blocks + out_block + scratch + temps + (16 << 20)  # headroom
    return int(min(max(total, 32 << 20), 56 << 20))


# ---------------------------------------------------------------------------
# Fused projection + flash attention kernel.
# ---------------------------------------------------------------------------
def _fused_attention_kernel(q_ref, k_ref, v_ref,
                            wq_ref, bq_ref, wk_ref, bk_ref, wv_ref, bv_ref,
                            o_ref, qp_sc, m_sc, l_sc, acc_sc,
                            *, causal, tq, tk, seq_len, mask_tail):
    # Bind program ids only at the top level and close over them; binding them
    # inside pl.when bodies broke the previous version's lowering.
    i = pl.program_id(1)
    j = pl.program_id(2)

    @pl.when(j == 0)
    def _init():
        # Project the Q tile once per (b, i); 1/sqrt(d_k) is folded into Wq/bq.
        qx = q_ref[...].astype(jnp.bfloat16)
        qp = jnp.dot(qx, wq_ref[...], preferred_element_type=jnp.float32) + bq_ref[...]
        qp_sc[...] = qp.astype(jnp.bfloat16)
        m_sc[...] = jnp.full_like(m_sc, -jnp.inf)
        l_sc[...] = jnp.zeros_like(l_sc)
        acc_sc[...] = jnp.zeros_like(acc_sc)

    def _step(apply_causal_mask):
        # Project this K/V tile in-kernel (weights resident in VMEM) -- no padded
        # QKV intermediate ever round-trips through HBM.
        kx = k_ref[...].astype(jnp.bfloat16)
        vx = v_ref[...].astype(jnp.bfloat16)
        kp = (jnp.dot(kx, wk_ref[...], preferred_element_type=jnp.float32)
              + bk_ref[...]).astype(jnp.bfloat16)                       # (tk, d_k)
        vp = (jnp.dot(vx, wv_ref[...], preferred_element_type=jnp.float32)
              + bv_ref[...]).astype(jnp.bfloat16)                       # (tk, d_v)

        s = jax.lax.dot_general(qp_sc[...], kp, (((1,), (1,)), ((), ())),
                                preferred_element_type=jnp.float32)     # (tq, tk)
        if mask_tail or apply_causal_mask:
            col = j * tk + jax.lax.broadcasted_iota(jnp.int32, (tq, tk), 1)
            if mask_tail:        # static flag: padded key columns beyond seq_len
                s = jnp.where(col >= seq_len, jnp.float32(_MASK_VALUE), s)
            if apply_causal_mask:
                row = i * tq + jax.lax.broadcasted_iota(jnp.int32, (tq, tk), 0)
                s = jnp.where(col > row, jnp.float32(_MASK_VALUE), s)

        m_prev = m_sc[...]
        m_new = jnp.maximum(m_prev, jnp.max(s, axis=-1, keepdims=True))
        alpha = jnp.exp(m_prev - m_new)                                 # (tq, 1)
        p = jnp.exp(s - m_new)                                          # (tq, tk)
        l_sc[...] = alpha * l_sc[...] + jnp.sum(p, axis=-1, keepdims=True)
        acc_sc[...] = alpha * acc_sc[...] + jnp.dot(
            p.astype(jnp.bfloat16), vp, preferred_element_type=jnp.float32)
        m_sc[...] = m_new

    if causal:
        q_lo, q_hi = i * tq, (i + 1) * tq - 1
        k_lo, k_hi = j * tk, (j + 1) * tk - 1
        live = k_lo <= q_hi                 # tile has at least one unmasked entry

        @pl.when(jnp.logical_and(live, k_hi > q_lo))
        def _diag_tile():                   # crosses the diagonal: needs the mask
            _step(True)

        @pl.when(jnp.logical_and(live, k_hi <= q_lo))
        def _full_tile():                   # entirely at/below the diagonal
            _step(False)
    else:
        _step(False)

    @pl.when(j == pl.num_programs(2) - 1)
    def _finalize():
        inv = pl.reciprocal(l_sc[...], approx=True)
        o_ref[...] = (acc_sc[...] * inv).astype(o_ref.dtype)


def scaled_dot_product_attention(q, k, v, params, *, causal_mask=False,
                                 tile_q=512, tile_k=512):
    """q, k, v: (B, L, d_model). params: torch-layout (Wq, bq, Wk, bk, Wv, bv)."""
    B, L, d_model = q.shape
    wq, bq, wk, bk, wv, bv = params
    d_k, d_v = wq.shape[0], wv.shape[0]
    scale = 1.0 / (float(d_k) ** 0.5)

    def _prep(w, b, s=1.0):
        # torch (out, in) -> (in, out) bf16 weight, f32 (1, out) bias.
        wt = (w.astype(jnp.float32).T * s).astype(jnp.bfloat16)
        bb = (b.astype(jnp.float32) * s).reshape(1, -1)
        return wt, bb

    wq_p, bq_p = _prep(wq, bq, scale)       # fold 1/sqrt(d_k) into Q projection
    wk_p, bk_p = _prep(wk, bk)
    wv_p, bv_p = _prep(wv, bv)

    tq, tk, Lp = _pick_tiles(L, tile_q, tile_k)
    if Lp != L:                             # pad awkward lengths; tail is masked
        pad = ((0, 0), (0, Lp - L), (0, 0))
        q = jnp.pad(q, pad)
        k = jnp.pad(k, pad)
        v = jnp.pad(v, pad)

    def _kv_block_idx(i, j):
        if causal_mask:
            # Clamp fully-masked kv tiles to the last live tile so the pipeline
            # repeats the previous block index and issues no dead-tile DMA.
            return jnp.minimum(j, ((i + 1) * tq - 1) // tk)
        return j

    kernel = functools.partial(_fused_attention_kernel, causal=causal_mask,
                               tq=tq, tk=tk, seq_len=L, mask_tail=(Lp != L))

    out = pl.pallas_call(
        kernel,
        out_shape=jax.ShapeDtypeStruct((B, Lp, d_v), q.dtype),
        grid=(B, Lp // tq, Lp // tk),
        in_specs=[
            pl.BlockSpec((None, tq, d_model), lambda b, i, j: (b, i, 0)),            # q
            pl.BlockSpec((None, tk, d_model),
                         lambda b, i, j: (b, _kv_block_idx(i, j), 0)),               # k
            pl.BlockSpec((None, tk, d_model),
                         lambda b, i, j: (b, _kv_block_idx(i, j), 0)),               # v
            pl.BlockSpec((d_model, d_k), lambda b, i, j: (0, 0)),                    # Wq
            pl.BlockSpec((1, d_k), lambda b, i, j: (0, 0)),                          # bq
            pl.BlockSpec((d_model, d_k), lambda b, i, j: (0, 0)),                    # Wk
            pl.BlockSpec((1, d_k), lambda b, i, j: (0, 0)),                          # bk
            pl.BlockSpec((d_model, d_v), lambda b, i, j: (0, 0)),                    # Wv
            pl.BlockSpec((1, d_v), lambda b, i, j: (0, 0)),                          # bv
        ],
        out_specs=pl.BlockSpec((None, tq, d_v), lambda b, i, j: (b, i, 0)),
        scratch_shapes=[
            pltpu.VMEM((tq, d_k), jnp.bfloat16),   # projected (pre-scaled) Q tile
            pltpu.VMEM((tq, 1), jnp.float32),      # running max  m
            pltpu.VMEM((tq, 1), jnp.float32),      # running sum  l
            pltpu.VMEM((tq, d_v), jnp.float32),    # output accumulator
        ],
        compiler_params=pltpu.CompilerParams(
            dimension_semantics=("parallel", "parallel", "arbitrary"),
            vmem_limit_bytes=_vmem_limit_bytes(tq, tk, d_model, d_k, d_v)),
    )(q, k, v, wq_p, bq_p, wk_p, bk_p, wv_p, bv_p)

    return out if Lp == L else out[:, :L, :]


def _reference(q, k, v, params, *, causal_mask=False):
    wq, bq, wk, bk, wv, bv = params
    Q = q @ wq.T + bq
    K = k @ wk.T + bk
    V = v @ wv.T + bv
    d_k = Q.shape[-1]
    scores = jnp.einsum("bqd,bkd->bqk", Q, K) / jnp.sqrt(jnp.float32(d_k))
    if causal_mask:
        L = scores.shape[-1]
        mask = jnp.triu(jnp.ones((L, L), jnp.bool_), k=1)
        scores = jnp.where(mask[None], -jnp.inf, scores)
    w = jax.nn.softmax(scores, axis=-1)
    return jnp.einsum("bqk,bkd->bqd", w, V)


if __name__ == "__main__":
    # Small, module-consistent shapes.
    B, L, d_model, d_k, d_v = 2, 8, 32, 16, 16

    key = jax.random.PRNGKey(0)
    kq, kk, kv, kwq, kbq, kwk, kbk, kwv, kbv = jax.random.split(key, 9)

    q = jax.random.normal(kq, (B, L, d_model), dtype=jnp.float32)
    k = jax.random.normal(kk, (B, L, d_model), dtype=jnp.float32)
    v = jax.random.normal(kv, (B, L, d_model), dtype=jnp.float32)

    # Deterministic parameter init (mimics nn.Linear's uniform(-1/sqrt(in), 1/sqrt(in))).
    bound = 1.0 / jnp.sqrt(jnp.float32(d_model))
    params = (
        jax.random.uniform(kwq, (d_k, d_model), jnp.float32, -bound, bound),
        jax.random.uniform(kbq, (d_k,), jnp.float32, -bound, bound),
        jax.random.uniform(kwk, (d_k, d_model), jnp.float32, -bound, bound),
        jax.random.uniform(kbk, (d_k,), jnp.float32, -bound, bound),
        jax.random.uniform(kwv, (d_v, d_model), jnp.float32, -bound, bound),
        jax.random.uniform(kbv, (d_v,), jnp.float32, -bound, bound),
    )

    out = scaled_dot_product_attention(q, k, v, params, causal_mask=False)
    out = jax.block_until_ready(out)

    ref = _reference(q, k, v, params, causal_mask=False)
    assert out.shape == (B, L, d_v)
    # bf16 MXU operands + approx reciprocal vs f32 reference -> relaxed tolerance.
    assert jnp.allclose(out, ref, atol=2e-2, rtol=2e-2)

    # Also exercise the causal-mask path once.
    out_m = jax.block_until_ready(
        scaled_dot_product_attention(q, k, v, params, causal_mask=True))
    ref_m = _reference(q, k, v, params, causal_mask=True)
    assert out_m.shape == (B, L, d_v)
    assert jnp.allclose(out_m, ref_m, atol=2e-2, rtol=2e-2)

    print("KERNEL_OK")
</pallas_src>

<mosaic_0001>
module attributes {stable_mosaic.version = 11 : i64} {
  func.func @_fused_attention_kernel(%arg0: i32, %arg1: i32, %arg2: i32, %arg3: memref<1x16x32xf32, #tpu.memory_space<vmem>>, %arg4: memref<1x16x32xf32, #tpu.memory_space<vmem>>, %arg5: memref<1x16x32xf32, #tpu.memory_space<vmem>>, %arg6: memref<32x16xbf16, #tpu.memory_space<vmem>>, %arg7: memref<1x16xf32, #tpu.memory_space<vmem>>, %arg8: memref<32x16xbf16, #tpu.memory_space<vmem>>, %arg9: memref<1x16xf32, #tpu.memory_space<vmem>>, %arg10: memref<32x16xbf16, #tpu.memory_space<vmem>>, %arg11: memref<1x16xf32, #tpu.memory_space<vmem>>, %arg12: memref<1x16x16xf32, #tpu.memory_space<vmem>>, %arg13: memref<16x16xbf16, #tpu.memory_space<vmem>>, %arg14: memref<16x1xf32, #tpu.memory_space<vmem>>, %arg15: memref<16x1xf32, #tpu.memory_space<vmem>>, %arg16: memref<16x16xf32, #tpu.memory_space<vmem>>) attributes {dimension_semantics = [#tpu.dimension_semantics<parallel>, #tpu.dimension_semantics<parallel>, #tpu.dimension_semantics<arbitrary>], iteration_bounds = array<i64: 2, 1, 1>, scalar_prefetch = 0 : i64, scratch_operands = 4 : i64, tpu.core_type = #tpu.core_type<tc>, window_params = [{transform_indices = @transform_0, window_bounds = array<i64: 1, 16, 32>}, {transform_indices = @transform_1, window_bounds = array<i64: 1, 16, 32>}, {transform_indices = @transform_2, window_bounds = array<i64: 1, 16, 32>}, {pipeline_mode = #tpu.pipeline_mode<synchronous>, transform_indices = @transform_3, window_bounds = array<i64: 32, 16>}, {pipeline_mode = #tpu.pipeline_mode<synchronous>, transform_indices = @transform_4, window_bounds = array<i64: 1, 16>}, {pipeline_mode = #tpu.pipeline_mode<synchronous>, transform_indices = @transform_5, window_bounds = array<i64: 32, 16>}, {pipeline_mode = #tpu.pipeline_mode<synchronous>, transform_indices = @transform_6, window_bounds = array<i64: 1, 16>}, {pipeline_mode = #tpu.pipeline_mode<synchronous>, transform_indices = @transform_7, window_bounds = array<i64: 32, 16>}, {pipeline_mode = #tpu.pipeline_mode<synchronous>, transform_indices = @transform_8, window_bounds = array<i64: 1, 16>}, {transform_indices = @transform_9, window_bounds = array<i64: 1, 16, 16>}]} {
    %c0_i32 = arith.constant 0 : i32
    %0 = arith.cmpi eq, %arg2, %c0_i32 : i32
    %1 = arith.extui %0 : i1 to i32
    %c0_i32_0 = arith.constant 0 : i32
    %2 = arith.cmpi ne, %1, %c0_i32_0 : i32
    scf.if %2 {
      %c0_36 = arith.constant 0 : index
      %c0_37 = arith.constant 0 : index
      %c0_38 = arith.constant 0 : index
      %57 = vector.load %arg3[%c0_36, %c0_37, %c0_38] : memref<1x16x32xf32, #tpu.memory_space<vmem>>, vector<1x16x32xf32>
      %58 = vector.shape_cast %57 : vector<1x16x32xf32> to vector<16x32xf32>
      %59 = arith.truncf %58 : vector<16x32xf32> to vector<16x32xbf16>
      %c0_39 = arith.constant 0 : index
      %c0_40 = arith.constant 0 : index
      %60 = vector.load %arg6[%c0_39, %c0_40] : memref<32x16xbf16, #tpu.memory_space<vmem>>, vector<32x16xbf16>
      %cst_41 = arith.constant dense<0.000000e+00> : vector<16x16xf32>
      %61 = tpu.matmul %59, %60, %cst_41 {dimension_numbers = #tpu.dot_dimension_numbers<[1], [0], [0], [1], [0, 0, 1, 1], [], []>} : vector<16x32xbf16>, vector<32x16xbf16>, vector<16x16xf32> -> vector<16x16xf32>
      %c0_42 = arith.constant 0 : index
      %c0_43 = arith.constant 0 : index
      %62 = vector.load %arg7[%c0_42, %c0_43] : memref<1x16xf32, #tpu.memory_space<vmem>>, vector<1x16xf32>
      %63 = vector.broadcast %62 : vector<1x16xf32> to vector<16x16xf32>
      %64 = arith.addf %61, %63 : vector<16x16xf32>
      %65 = arith.truncf %64 : vector<16x16xf32> to vector<16x16xbf16>
      %c0_44 = arith.constant 0 : index
      %c0_45 = arith.constant 0 : index
      %66 = vector.load %arg13[%c0_44, %c0_45] : memref<16x16xbf16, #tpu.memory_space<vmem>>, vector<16x16xbf16>
      tpu.vector_store %arg13[%c0_44, %c0_45], %65 {strides = array<i32>} : memref<16x16xbf16, #tpu.memory_space<vmem>>, vector<16x16xbf16>,
      %cst_46 = arith.constant 0xFF800000 : f32
      %67 = vector.broadcast %cst_46 : f32 to vector<16x1xf32>
      %c0_47 = arith.constant 0 : index
      %c0_48 = arith.constant 0 : index
      %68 = vector.load %arg14[%c0_47, %c0_48] : memref<16x1xf32, #tpu.memory_space<vmem>>, vector<16x1xf32>
      tpu.vector_store %arg14[%c0_47, %c0_48], %67 {strides = array<i32>} : memref<16x1xf32, #tpu.memory_space<vmem>>, vector<16x1xf32>,
      %cst_49 = arith.constant 0.000000e+00 : f32
      %69 = vector.broadcast %cst_49 : f32 to vector<16x1xf32>
      %c0_50 = arith.constant 0 : index
      %c0_51 = arith.constant 0 : index
      %70 = vector.load %arg15[%c0_50, %c0_51] : memref<16x1xf32, #tpu.memory_space<vmem>>, vector<16x1xf32>
      tpu.vector_store %arg15[%c0_50, %c0_51], %69 {strides = array<i32>} : memref<16x1xf32, #tpu.memory_space<vmem>>, vector<16x1xf32>,
      %cst_52 = arith.constant 0.000000e+00 : f32
      %71 = vector.broadcast %cst_52 : f32 to vector<16x16xf32>
      %c0_53 = arith.constant 0 : index
      %c0_54 = arith.constant 0 : index
      %72 = vector.load %arg16[%c0_53, %c0_54] : memref<16x16xf32, #tpu.memory_space<vmem>>, vector<16x16xf32>
      tpu.vector_store %arg16[%c0_53, %c0_54], %71 {strides = array<i32>} : memref<16x16xf32, #tpu.memory_space<vmem>>, vector<16x16xf32>,
    } else {
    }
    %c0 = arith.constant 0 : index
    %c0_1 = arith.constant 0 : index
    %c0_2 = arith.constant 0 : index
    %3 = vector.load %arg4[%c0, %c0_1, %c0_2] : memref<1x16x32xf32, #tpu.memory_space<vmem>>, vector<1x16x32xf32>
    %4 = vector.shape_cast %3 : vector<1x16x32xf32> to vector<16x32xf32>
    %5 = arith.truncf %4 : vector<16x32xf32> to vector<16x32xbf16>
    %c0_3 = arith.constant 0 : index
    %c0_4 = arith.constant 0 : index
    %c0_5 = arith.constant 0 : index
    %6 = vector.load %arg5[%c0_3, %c0_4, %c0_5] : memref<1x16x32xf32, #tpu.memory_space<vmem>>, vector<1x16x32xf32>
    %7 = vector.shape_cast %6 : vector<1x16x32xf32> to vector<16x32xf32>
    %8 = arith.truncf %7 : vector<16x32xf32> to vector<16x32xbf16>
    %c0_6 = arith.constant 0 : index
    %c0_7 = arith.constant 0 : index
    %9 = vector.load %arg8[%c0_6, %c0_7] : memref<32x16xbf16, #tpu.memory_space<vmem>>, vector<32x16xbf16>
    %cst = arith.constant dense<0.000000e+00> : vector<16x16xf32>
    %10 = tpu.matmul %5, %9, %cst {dimension_numbers = #tpu.dot_dimension_numbers<[1], [0], [0], [1], [0, 0, 1, 1], [], []>} : vector<16x32xbf16>, vector<32x16xbf16>, vector<16x16xf32> -> vector<16x16xf32>
    %c0_8 = arith.constant 0 : index
    %c0_9 = arith.constant 0 : index
    %11 = vector.load %arg9[%c0_8, %c0_9] : memref<1x16xf32, #tpu.memory_space<vmem>>, vector<1x16xf32>
    %12 = vector.broadcast %11 : vector<1x16xf32> to vector<16x16xf32>
    %13 = arith.addf %10, %12 : vector<16x16xf32>
    %14 = arith.truncf %13 : vector<16x16xf32> to vector<16x16xbf16>
    %c0_10 = arith.constant 0 : index
    %c0_11 = arith.constant 0 : index
    %15 = vector.load %arg10[%c0_10, %c0_11] : memref<32x16xbf16, #tpu.memory_space<vmem>>, vector<32x16xbf16>
    %cst_12 = arith.constant dense<0.000000e+00> : vector<16x16xf32>
    %16 = tpu.matmul %8, %15, %cst_12 {dimension_numbers = #tpu.dot_dimension_numbers<[1], [0], [0], [1], [0, 0, 1, 1], [], []>} : vector<16x32xbf16>, vector<32x16xbf16>, vector<16x16xf32> -> vector<16x16xf32>
    %c0_13 = arith.constant 0 : index
    %c0_14 = arith.constant 0 : index
    %17 = vector.load %arg11[%c0_13, %c0_14] : memref<1x16xf32, #tpu.memory_space<vmem>>, vector<1x16xf32>
    %18 = vector.broadcast %17 : vector<1x16xf32> to vector<16x16xf32>
    %19 = arith.addf %16, %18 : vector<16x16xf32>
    %20 = arith.truncf %19 : vector<16x16xf32> to vector<16x16xbf16>
    %c0_15 = arith.constant 0 : index
    %c0_16 = arith.constant 0 : index
    %21 = vector.load %arg13[%c0_15, %c0_16] : memref<16x16xbf16, #tpu.memory_space<vmem>>, vector<16x16xbf16>
    %cst_17 = arith.constant dense<0.000000e+00> : vector<16x16xf32>
    %22 = tpu.matmul %21, %14, %cst_17 {dimension_numbers = #tpu.dot_dimension_numbers<[1], [1], [0], [0], [0, 0, 1, 0], [], []>} : vector<16x16xbf16>, vector<16x16xbf16>, vector<16x16xf32> -> vector<16x16xf32>
    %c16_i32 = arith.constant 16 : i32
    %23 = arith.muli %arg2, %c16_i32 : i32
    %24 = tpu.iota {dimensions = array<i32: 1>} : vector<16x16xi32>
    %25 = vector.broadcast %23 : i32 to vector<16x16xi32>
    %26 = arith.addi %25, %24 : vector<16x16xi32>
    %c8_i32 = arith.constant 8 : i32
    %27 = vector.broadcast %c8_i32 : i32 to vector<16x16xi32>
    %28 = arith.cmpi sge, %26, %27 : vector<16x16xi32>
    %cst_18 = arith.constant -1.000000e+30 : f32
    %29 = vector.broadcast %cst_18 : f32 to vector<16x16xf32>
    %30 = arith.select %28, %29, %22 : vector<16x16xi1>, vector<16x16xf32>
    %c0_19 = arith.constant 0 : index
    %c0_20 = arith.constant 0 : index
    %31 = vector.load %arg14[%c0_19, %c0_20] : memref<16x1xf32, #tpu.memory_space<vmem>>, vector<16x1xf32>
    %cst_21 = arith.constant dense<0xFF800000> : vector<16xf32>
    %32 = vector.multi_reduction <maximumf>, %30, %cst_21 [1] : vector<16x16xf32> to vector<16xf32>
    %33 = vector.shape_cast %32 : vector<16xf32> to vector<16x1xf32>
    %34 = arith.maximumf %31, %33 : vector<16x1xf32>
    %35 = arith.subf %31, %34 : vector<16x1xf32>
    %36 = math.exp %35 : vector<16x1xf32>
    %37 = vector.broadcast %34 : vector<16x1xf32> to vector<16x16xf32>
    %38 = arith.subf %30, %37 : vector<16x16xf32>
    %39 = math.exp %38 : vector<16x16xf32>
    %c0_22 = arith.constant 0 : index
    %c0_23 = arith.constant 0 : index
    %40 = vector.load %arg15[%c0_22, %c0_23] : memref<16x1xf32, #tpu.memory_space<vmem>>, vector<16x1xf32>
    %41 = arith.mulf %36, %40 : vector<16x1xf32>
    %cst_24 = arith.constant dense<0.000000e+00> : vector<16xf32>
    %42 = vector.multi_reduction <add>, %39, %cst_24 [1] : vector<16x16xf32> to vector<16xf32>
    %43 = vector.shape_cast %42 : vector<16xf32> to vector<16x1xf32>
    %44 = arith.addf %41, %43 : vector<16x1xf32>
    %c0_25 = arith.constant 0 : index
    %c0_26 = arith.constant 0 : index
    %45 = vector.load %arg15[%c0_25, %c0_26] : memref<16x1xf32, #tpu.memory_space<vmem>>, vector<16x1xf32>
    tpu.vector_store %arg15[%c0_25, %c0_26], %44 {strides = array<i32>} : memref<16x1xf32, #tpu.memory_space<vmem>>, vector<16x1xf32>,
    %c0_27 = arith.constant 0 : index
    %c0_28 = arith.constant 0 : index
    %46 = vector.load %arg16[%c0_27, %c0_28] : memref<16x16xf32, #tpu.memory_space<vmem>>, vector<16x16xf32>
    %47 = vector.broadcast %36 : vector<16x1xf32> to vector<16x16xf32>
    %48 = arith.mulf %47, %46 : vector<16x16xf32>
    %49 = arith.truncf %39 : vector<16x16xf32> to vector<16x16xbf16>
    %cst_29 = arith.constant dense<0.000000e+00> : vector<16x16xf32>
    %50 = tpu.matmul %49, %20, %cst_29 {dimension_numbers = #tpu.dot_dimension_numbers<[1], [0], [0], [1], [0, 0, 1, 1], [], []>} : vector<16x16xbf16>, vector<16x16xbf16>, vector<16x16xf32> -> vector<16x16xf32>
    %51 = arith.addf %48, %50 : vector<16x16xf32>
    %c0_30 = arith.constant 0 : index
    %c0_31 = arith.constant 0 : index
    %52 = vector.load %arg16[%c0_30, %c0_31] : memref<16x16xf32, #tpu.memory_space<vmem>>, vector<16x16xf32>
    tpu.vector_store %arg16[%c0_30, %c0_31], %51 {strides = array<i32>} : memref<16x16xf32, #tpu.memory_space<vmem>>, vector<16x16xf32>,
    %c0_32 = arith.constant 0 : index
    %c0_33 = arith.constant 0 : index
    %53 = vector.load %arg14[%c0_32, %c0_33] : memref<16x1xf32, #tpu.memory_space<vmem>>, vector<16x1xf32>
    tpu.vector_store %arg14[%c0_32, %c0_33], %34 {strides = array<i32>} : memref<16x1xf32, #tpu.memory_space<vmem>>, vector<16x1xf32>,
    %c0_i32_34 = arith.constant 0 : i32
    %54 = arith.cmpi eq, %arg2, %c0_i32_34 : i32
    %55 = arith.extui %54 : i1 to i32
    %c0_i32_35 = arith.constant 0 : i32
    %56 = arith.cmpi ne, %55, %c0_i32_35 : i32
    scf.if %56 {
      %c0_36 = arith.constant 0 : index
      %c0_37 = arith.constant 0 : index
      %57 = vector.load %arg15[%c0_36, %c0_37] : memref<16x1xf32, #tpu.memory_space<vmem>>, vector<16x1xf32>
      %58 = tpu.reciprocal %57 {approx = true} : vector<16x1xf32> -> vector<16x1xf32>
      %c0_38 = arith.constant 0 : index
      %c0_39 = arith.constant 0 : index
      %59 = vector.load %arg16[%c0_38, %c0_39] : memref<16x16xf32, #tpu.memory_space<vmem>>, vector<16x16xf32>
      %60 = vector.broadcast %58 : vector<16x1xf32> to vector<16x16xf32>
      %61 = arith.mulf %59, %60 : vector<16x16xf32>
      %c0_40 = arith.constant 0 : index
      %c0_41 = arith.constant 0 : index
      %c0_42 = arith.constant 0 : index
      %62 = vector.load %arg12[%c0_40, %c0_41, %c0_42] : memref<1x16x16xf32, #tpu.memory_space<vmem>>, vector<1x16x16xf32>
      %63 = vector.shape_cast %62 : vector<1x16x16xf32> to vector<16x16xf32>
      %64 = vector.shape_cast %61 : vector<16x16xf32> to vector<1x16x16xf32>
      tpu.vector_store %arg12[%c0_40, %c0_41, %c0_42], %64 {strides = array<i32>} : memref<1x16x16xf32, #tpu.memory_space<vmem>>, vector<1x16x16xf32>,
    } else {
    }
    return
  }
  func.func @transform_0(%arg0: i32, %arg1: i32, %arg2: i32) -> (i32, i32, i32) {
    %c0_i32 = arith.constant 0 : i32
    %c0_i32_0 = arith.constant 0 : i32
    return %arg0, %arg1, %c0_i32 : i32, i32, i32
  }
  func.func @transform_1(%arg0: i32, %arg1: i32, %arg2: i32) -> (i32, i32, i32) {
    %c0_i32 = arith.constant 0 : i32
    %c0_i32_0 = arith.constant 0 : i32
    return %arg0, %arg2, %c0_i32 : i32, i32, i32
  }
  func.func @transform_2(%arg0: i32, %arg1: i32, %arg2: i32) -> (i32, i32, i32) {
    %c0_i32 = arith.constant 0 : i32
    %c0_i32_0 = arith.constant 0 : i32
    return %arg0, %arg2, %c0_i32 : i32, i32, i32
  }
  func.func @transform_3(%arg0: i32, %arg1: i32, %arg2: i32) -> (i32, i32) {
    %c0_i32 = arith.constant 0 : i32
    %c0_i32_0 = arith.constant 0 : i32
    %c0_i32_1 = arith.constant 0 : i32
    return %c0_i32, %c0_i32_0 : i32, i32
  }
  func.func @transform_4(%arg0: i32, %arg1: i32, %arg2: i32) -> (i32, i32) {
    %c0_i32 = arith.constant 0 : i32
    %c0_i32_0 = arith.constant 0 : i32
    %c0_i32_1 = arith.constant 0 : i32
    return %c0_i32, %c0_i32_0 : i32, i32
  }
  func.func @transform_5(%arg0: i32, %arg1: i32, %arg2: i32) -> (i32, i32) {
    %c0_i32 = arith.constant 0 : i32
    %c0_i32_0 = arith.constant 0 : i32
    %c0_i32_1 = arith.constant 0 : i32
    return %c0_i32, %c0_i32_0 : i32, i32
  }
  func.func @transform_6(%arg0: i32, %arg1: i32, %arg2: i32) -> (i32, i32) {
    %c0_i32 = arith.constant 0 : i32
    %c0_i32_0 = arith.constant 0 : i32
    %c0_i32_1 = arith.constant 0 : i32
    return %c0_i32, %c0_i32_0 : i32, i32
  }
  func.func @transform_7(%arg0: i32, %arg1: i32, %arg2: i32) -> (i32, i32) {
    %c0_i32 = arith.constant 0 : i32
    %c0_i32_0 = arith.constant 0 : i32
    %c0_i32_1 = arith.constant 0 : i32
    return %c0_i32, %c0_i32_0 : i32, i32
  }
  func.func @transform_8(%arg0: i32, %arg1: i32, %arg2: i32) -> (i32, i32) {
    %c0_i32 = arith.constant 0 : i32
    %c0_i32_0 = arith.constant 0 : i32
    %c0_i32_1 = arith.constant 0 : i32
    return %c0_i32, %c0_i32_0 : i32, i32
  }
  func.func @transform_9(%arg0: i32, %arg1: i32, %arg2: i32) -> (i32, i32, i32) {
    %c0_i32 = arith.constant 0 : i32
    %c0_i32_0 = arith.constant 0 : i32
    return %arg0, %arg1, %c0_i32 : i32, i32, i32
  }
}

</mosaic_0001>

<bundles_post_ra>
// kernel: tpu_custom_call.1
= control target key start
LH: loop header
LB: loop body
LE: loop exit
PB: predicated region body
PF: predicated region fallthrough
CT: control target
= control target key end

     0   :  { %s1628_s0 = inlined_call_operand.vmem [shape: f32[2,16,32], index: 0, kind: input, shape index: {}]   ;;  %s1629_s1 = inlined_call_operand.vmem [shape: f32[2,16,32], index: 1, kind: input, shape index: {}]   ;;  %s1630_s2 = inlined_call_operand.hbm [shape: f32[2,16,32], index: 2, kind: input, shape index: {}]   ;;  %s1631_s3 = inlined_call_operand.vmem [shape: bf16[32,16], index: 3, kind: input, shape index: {}]   ;;  %s1632_s4 = inlined_call_operand.vmem [shape: f32[1,16], index: 4, kind: input, shape index: {}]   ;;  %s1633_s5 = inlined_call_operand.vmem [shape: bf16[32,16], index: 5, kind: input, shape index: {}]   ;;  %s1634_s6 = inlined_call_operand.vmem [shape: f32[1,16], index: 6, kind: input, shape index: {}]   ;;  %s1635_s7 = inlined_call_operand.vmem [shape: bf16[32,16], index: 7, kind: input, shape index: {}]   ;;  %s1636_s8 = inlined_call_operand.vmem [shape: f32[1,16], index: 8, kind: input, shape index: {}]   ;;  %s1637_s9 = inlined_call_operand.hbm [shape: f32[2,16,16], index: 9, kind: output, shape index: {}]  }
   0x1   :  { %1643 = sst [smem:[#allocation16_spill]] %s1630_s2 }
   0x2   :  { %14 = vsyncpa [#allocation7], 0 }
   0x3   :  { %16 = vsyncpa [#allocation7 + $0x1], 0 }
   0x4   :  { %17 = vsyncpa [#allocation8], 0 }
   0x5   :  { %19 = vsyncpa [#allocation8 + $0x1], 0  ;;  %s1363_s30 = smov 0   ;;  %s1365_s10 = smov 0  }
   0x6   :  { %s1367_s11 = smov 0   ;;  %s1369_s12 = smov 0  }
   0x7   :  { %s1371_s13 = smov 0   ;;  %s1373_s14 = smov 0  }
   0x8 LB: > { %1644 = sst [smem:[#allocation12_spill]] %s1289_s11  ;;  %s1013_s15 = sadd.s32 4294967295, %s1301_s14   ;;  %s1301_s14 = sphi %s1373_s14, %s25_s14   ;;  %s1297_s13 = sphi %s1371_s13, %s1662_s13   ;;  %s1293_s12 = sphi %s1369_s12, %s1665_s12   ;;  %s1289_s11 = sphi %s1367_s11, %s1660_s11   ;;  %s1285_s10 = sphi %s1365_s10, %s1664_s10   ;;  %s1281_s30 = sphi %s1363_s30, %s1663_s30  }
   0x9   : > { %1645 = sst [smem:[#allocation13_spill]] %s1297_s13  ;;  %s1014_s16 = sadd.s32 4294967294, %s1301_s14  }
   0xa   : > { %s44_s17 = sadd.s32 1, %s1297_s13  ;;  %s109_s18 = sadd.s32 1, %s1289_s11 }
   0xb   : > { %p46_p0 = scmp.ge.s32.totalorder %s44_s17, 2  ;;  %p116_p1 = scmp.ne.s32.totalorder %s1289_s11, %s1285_s10 }
   0xc   : > { %p117_p2 = scmp.eq.s32.totalorder %s1301_s14, 0  ;;  %p122_p3 = scmp.ne.s32.totalorder %s1285_s10, %s1281_s30 }
   0xd   : > { %s1667_s17 = smov (%p46_p0, %s44_s17), 0  ;;  %p123_p5 = scmp.eq.s32.totalorder %s1013_s15, 0 }
   0xe   : > { %1646 = sst [smem:[#allocation14_spill]] %s1667_s17  ;;  %p1404_p4 = por %p117_p2, %p116_p1 }
   0xf   : > { %s104_s20 = ssub.s32 %s1297_s13, %s1667_s17  ;;  %p274_p6 = scmp.eq.s32.totalorder %s1013_s15, 1 }
  0x10   : > { %p107_p7 = scmp.eq.s32.totalorder %s104_s20, 0  ;;  %p1410_p8 = por %p123_p5, %p122_p3 }
  0x11   : > { %p1414_p9 = por %p274_p6, %p116_p1  ;;  %p280_p10 = scmp.eq.s32.totalorder %s1014_s16, 1 }
  0x12   : > { %s1419_s23 = scalar_select %p107_p7, %s1289_s11, %s109_s18  }
  0x13   : > { %s1649_s22 = scalar_select %p1414_p9, 1, 0 }
  0x14   : > { %1650 = sst [smem:[#allocation15_spill]] %s1419_s23  ;;  %p1421_p11 = por %p280_p10, %p122_p3 }
  0x15   : > { %p1111_p13 = scmp.lt.s32.totalorder %s1301_s14, 2  ;;  %s344_s25 = sand.u32 1, %s1289_s11  }
  0x16   : > { %s1651_s24 = scalar_select %p1421_p11, 1, 0 }
  0x17   : > { %s1017_s26 = sshll.u32 %s344_s25, 4  ;;  %s1046_s27 = sshll.u32 %s1297_s13, 8 }
  0x18   : > { %s1652_s2 = sld [smem:[#allocation16_spill]]  ;;  %s348_s16 = scalar_lea.vmem [#allocation6], %s1017_s26 }
  0x19   : > { %s357_s18 = sshll.u32 %s348_s16, 4  ;;  %p1438_p0 = pnand %p1111_p13, %p1404_p4  ;;  %s1434_s18 = int_to_ptr.vmem [resolvable:$true] %s357_s18 }
  0x1a   : > { %s1443_s17 = scalar_lea.sflag [#allocation7], %s344_s25 }
  0x1b   : > { %p1191_p3 = pneg %p1438_p0 }
  0x1e   : > { %s1432_s15 = scalar_lea.hbm %s1652_s2, %s1046_s27  ;;  %s1194_s19 = scalar_lea.hbm %s1652_s2, 512 }
  0x1f   : > { %s1189_s27 = scalar_lea.hbm %s1432_s15, 256  ;;  %p1195_p4 = scmp.lt.u32.totalorder %s1432_s15, %s1652_s2 }
  0x20   : > { %p1190_p2 = scmp.ne.s32.totalorder %s1432_s15, %s1189_s27  ;;  %p1196_p7 = scmp.lt.u32.totalorder %s1194_s19, %s1189_s27 }
  0x21   : > { %p1198_p13 = scmp.lt.u32.totalorder %s1189_s27, %s1432_s15 }
  0x22   : > { %p1192_p5 = pnand %p1191_p3, %p1190_p2  ;;  %p1197_p10 = por %p1196_p7, %p1195_p4 }
  0x24   : > { %p1193_p6 = pneg %p1192_p5  ;;  %p1199_p12 = por %p1198_p13, %p1197_p10 }
  0x26   : > { %p1200_p1 = pnand %p1199_p12, %p1193_p6 }
  0x28   : > { %1203 = shalt.err (!%p1200_p1)
}
  0x29   : > { %s1204_s25 = scalar_lea.vmem %s1434_s18, 256  ;;  %s1303_s26 = smov [#allocation6]  }
  0x2a   : > { %p1205_p2 = scmp.ne.s32.totalorder %s1434_s18, %s1204_s25  ;;  %s1209_s28 = sshll.u32 %s1303_s26, 4  ;;  %s1210_s28 = int_to_ptr.vmem [resolvable:$false] %s1209_s28 }
  0x2b   : > { %s1211_s29 = scalar_lea.vmem %s1210_s28, 512  ;;  %p1212_p9 = scmp.lt.s32.totalorder %s1434_s18, %s1210_s28 }
  0x2c   : > { %p1207_p5 = pnand %p1205_p2, %p1191_p3  ;;  %p1213_p4 = scmp.lt.s32.totalorder %s1211_s29, %s1204_s25 }
  0x2e   : > { %p1208_p11 = pneg %p1207_p5  ;;  %p1214_p7 = por %p1213_p4, %p1212_p9 }
  0x30   : > { %p1215_p10 = pnand %p1214_p7, %p1208_p11 }
  0x32   : > { %1218 = shalt.err (!%p1215_p10)
}
  0x33   : > { %s1304_s27 = smov 128   ;;  %s1305_s19 = smov 8  }
  0x34   : > { %1106 = dma.hbm_to_vmem [thread:$0]  (!%p1438_p0), %s1432_s15, 256, %s1434_s18, %s1443_s17, %s1304_s27, %s1304_s27, %s1305_s19  }
  0x35   : > { %p365_p12 = scmp.lt.s32.totalorder %s1301_s14, 3  ;;  %p1654_p1 = scmp.ge.s32.totalorder %s1301_s14, 1 }
  0x37   : > { %p366_p3 = pnand %p1654_p1, %p365_p12 }
  0x38   : > { %s1475_s16 = sand.u32 (!%p366_p3), 1, %s1285_s10  }
  0x39   : > { %369 = sbr.rel (%p366_p3) target bundleno = 1115 (0x45b), region = 56  ;;  %s1640_s25 = sshll.u32 (!%p366_p3), %s1475_s16, 4 }
  0x3a   : > { %s372_s26 = scalar_lea.sflag (!%p366_p3), [#allocation7], %s1475_s16  ;;  %s1481_s28 = scalar_lea.vmem (!%p366_p3), [#allocation6], %s1640_s25 }
  0x40   : > { %1272 = dma.done.wait (%p1410_p8), %s372_s26, 256  }
  0x41   : > { %1274 = vsyncadd (%p1410_p8), %s372_s26, 4294967040  ;;  %p429_p9 = scmp.lt.s32.totalorder %s1293_s12, 1  ;;  %v1306_v0 = vmov 0.0   ;;  %vm1307_vm0 = vmmov 0   ;;  %v1171_v1 = vld [vmem:[%s1631_s3] sm:$0xff]   ;;  %v1173_v3 = vld [vmem:[%s1631_s3 + $0x8] sm:$0xff]   ;;  %v729_v35 = vlaneseq }
  0x42   : > { %1063 = vmatprep.subr.bf16.mxu0 %v1306_v0  ;;  %1071 = vmatprep.subr.bf16.mxu1 %v1306_v0  ;;  %v1172_v2 = vld [vmem:[%s1633_s5] sm:$0xff]   ;;  %v1174_v4 = vld [vmem:[%s1633_s5 + $0x8] sm:$0xff]   ;;  %vm481_vm1 = vcmask 261120   ;;  %vm527_vm2 = vcmask 130048   ;;  %vm529_vm3 = vcmask 7168   ;;  %v1308_v30 = vmov -inf  }
  0x43   : > { %1067 = vmatprep.mubr.msk.bf16.mxu0 %vm1307_vm0, %v1306_v0  ;;  %1075 = vmatprep.mubr.msk.bf16.mxu1 %vm1307_vm0, %v1306_v0  ;;  %s430_s17 = scalar_select %p429_p9, %s1293_s12, 1  ;;  %534 = vst.msk [vmem:[#allocation5] sm:$0xff] %vm527_vm2, %v1306_v0  ;;  %535 = vst.msk [vmem:[#allocation5 + $0x8] sm:$0xff] %vm527_vm2, %v1306_v0  ;;  %v1027_v11 = vld [vmem:[%s1632_s4] ss:$0 sm:$0xff]  ;;  %v1176_v31 = vld [vmem:[%s1635_s7 + $0x8] sm:$0xff]  }
  0x44   : > { %1064 = vmatpush3.bf16.msra.mxu0 %v1171_v1  ;;  %1072 = vmatpush3.bf16.msra.mxu1 %v1172_v2  ;;  %v1031_v13 = vld [vmem:[%s1634_s6] ss:$0 sm:$0xff]  ;;  %530 = vst.msk [vmem:[#allocation3] sm:$0xff] %vm529_vm3, %v1308_v30  ;;  %531 = vst.msk [vmem:[#allocation3 + $0x8] sm:$0xff] %vm529_vm3, %v1308_v30  ;;  %v539_v32 = vld [vmem:[%s1481_s28] sm:$0xff]  ;;  %v730_v36 = vand.u32 127, %v729_v35 }
  0x45   : > { %s1047_s15 = sshll.u32 %s430_s17, 4  ;;  %1065 = vmatprep.subr.bf16.mxu0 %v1306_v0  ;;  %1073 = vmatprep.subr.bf16.mxu1 %v1306_v0  ;;  %v1175_v29 = vld [vmem:[%s1635_s7] sm:$0xff]   ;;  %532 = vst.msk [vmem:[#allocation4] sm:$0xff] %vm529_vm3, %v1306_v0  ;;  %533 = vst.msk [vmem:[#allocation4 + $0x8] sm:$0xff] %vm529_vm3, %v1306_v0  ;;  %v1309_v45 = vmov 0   ;;  %s1655_s27 = sshll.u32 %s1475_s16, 4 }
  0x46   : > { %s436_s26 = scalar_lea.vmem %s1628_s0, %s1047_s15  ;;  %s446_s13 = scalar_lea.vmem %s1629_s1, %s1047_s15  ;;  %v540_v33 = vld [vmem:[%s1481_s28 + $0x8] sm:$0xff]  ;;  %vm733_vm4 = vcmp.ge.s32.totalorder %v730_v36, 8  ;;  %1169 = vset.pattern.permute.xlu1 %v1309_v45  ;;  %1170 = vset.pattern.permute.xlu0 %v1309_v45 }
  0x47   : > { %v455_v5 = vld [vmem:[%s436_s26] sm:$0xff]  ;;  %v456_v6 = vld [vmem:[%s436_s26 + $0x8] sm:$0xff]  ;;  %v541_v34 = vpack.c.bf16 %v540_v33, %v539_v32  ;;  %s427_s19 = scalar_lea.vmem [#allocation9], %s1655_s27  ;;  %s1049_s17 = sshll.u32 %s1293_s12, 8 }
  0x48   : > { %v536_v7 = vld [vmem:[%s446_s13] sm:$0xff]  ;;  %v457_v8 = vpack.c.bf16 %v456_v6, %v455_v5  ;;  %v537_v9 = vld [vmem:[%s446_s13 + $0x8] sm:$0xff]  ;;  %1066 = vmatpush3.bf16.msra.mxu0 %v1173_v3  ;;  %1074 = vmatpush3.bf16.msra.mxu1 %v1174_v4  ;;  %s887_s26 = sshll.u32 %s427_s19, 4  ;;  %s1578_s11 = scalar_lea.hbm %s1637_s9, %s1049_s17  ;;  %s1572_s26 = int_to_ptr.vmem [resolvable:$true] %s887_s26 }
  0x49   : > { %v538_v10 = vpack.c.bf16 %v537_v9, %v536_v7  ;;  %1079 = vmatprep.subr.bf16.mxu0 %v1306_v0  ;;  %1087 = vmatprep.subr.bf16.mxu1 %v1306_v0  ;;  %v1035_v54 = vld [vmem:[%s1636_s8] ss:$0 sm:$0xff]  ;;  %s872_s13 = scalar_lea.sflag [#allocation8], %s1475_s16  ;;  %s1219_s23 = scalar_lea.vmem %s1572_s26, 256 }
  0x4a   : > { %p1220_p8 = scmp.ne.s32.totalorder %s1572_s26, %s1219_s23  ;;  %p1656_p11 = scmp.ne.s32.totalorder %s1649_s22, 0 }
  0x4b   : > { %1068 = vmatmul.mubr.msk.bf16.vlgmr.msra.gmra.mrb[0].mxu0 %vm481_vm1, %v457_v8  ;;  %1076 = vmatmul.mubr.msk.bf16.vlgmr.msra.gmra.mrb[0].mxu1 %vm481_vm1, %v538_v10  ;;  %v736_v46 = vld [vmem:[#allocation3] sm:$0xff]  ;;  %v737_v49 = vld [vmem:[#allocation3 + $0x8] sm:$0xff]  ;;  %s1310_s12 = smov [#allocation9]  }
  0x4c   : > { %1083 = vmatprep.mubr.msk.bf16.mxu0 %vm1307_vm0, %v1306_v0  ;;  %1089 = vmatprep.mubr.msk.bf16.mxu1 %vm1307_vm0, %v1306_v0  ;;  %p1221_p0 = pnand %p1220_p8, %p1656_p11  ;;  %s1223_s25 = sshll.u32 %s1310_s12, 4  ;;  %s1224_s25 = int_to_ptr.vmem [resolvable:$false] %s1223_s25 }
  0x4d   : > { %1080 = vmatpush3.bf16.msra.mxu0 %v1175_v29  ;;  %s1225_s15 = scalar_lea.vmem %s1224_s25, 512  ;;  %p1226_p13 = scmp.lt.s32.totalorder %s1572_s26, %s1224_s25 }
  0x4e   : > { %1081 = vmatprep.subr.bf16.mxu0 %v1306_v0  ;;  %p1222_p6 = pneg %p1221_p0  ;;  %p1227_p2 = scmp.lt.s32.totalorder %s1225_s15, %s1219_s23 }
  0x50   : > { %p1228_p5 = por %p1227_p2, %p1226_p13 }
  0x51   : > { %1082 = vmatpush3.bf16.msra.mxu0 %v1176_v31 }
  0x52   : > { %1093 = vmatprep.subr.bf16.mxu0 %v1306_v0  ;;  %p1229_p4 = pnand %p1228_p5, %p1222_p6 }
  0x54   : > { %1084 = vmatmul.mubr.msk.bf16.vlgmr.msra.gmra.mrb[4].mxu0 %vm481_vm1, %v541_v34 }
  0x55   : > { %1095 = vmatprep.mubr.msk.bf16.mxu0 %vm1307_vm0, %v1306_v0 }
 0x11e   : > { %v519_v12 = vpop.f32.mrb[0].mxu0  ;;  %v603_v14 = vpop.f32.mrb[0].mxu1 }
 0x11f   : > { %v1069_v15 = vpop.f32.mrb[1].mxu0  ;;  %v1077_v16 = vpop.f32.mrb[1].mxu1  ;;  %v520_v18 = vadd.f32 %v1027_v11, %v519_v12  ;;  %v604_v22 = vadd.f32 %v1031_v13, %v603_v14 }
 0x120   : > { %v522_v17 = vpop.f32.mrb[2].mxu0  ;;  %v606_v20 = vpop.f32.mrb[2].mxu1  ;;  %v769_v16 = vld [vmem:[#allocation4 + $0x8] sm:$0xff] }
 0x121   : > { %v523_v19 = vadd.f32 %v1027_v11, %v522_v17  ;;  %v1070_v21 = vpop.f32.mrb[3].mxu0  ;;  %v607_v23 = vadd.f32 %v1031_v13, %v606_v20  ;;  %v1078_v24 = vpop.f32.mrb[3].mxu1  ;;  %v768_v13 = vld [vmem:[#allocation4] sm:$0xff] }
 0x123   : > { %v526_v25 = vpack.c.bf16 %v523_v19, %v520_v18  ;;  %v610_v26 = vpack.c.bf16 %v607_v23, %v604_v22 }
 0x125   : > { %528 = vst.msk [vmem:[#allocation2] sm:$0xff] %vm527_vm2, %v526_v25  ;;  %v685_v27 = vsel %vm527_vm2, %v610_v26, 0  ;;  %v783_v25 = vld [vmem:[#allocation5] sm:$0xff] }
 0x126   : > { %1088 = vmatpush3.bf16.xpose.msra.mxu1 %v685_v27  ;;  %v784_v27 = vld [vmem:[#allocation5 + $0x8] sm:$0xff] }
 0x127   : > { %v671_v55 = vpop.f32.mrb[4].mxu0 }
 0x128   : > { %v672_v56 = vadd.f32 %v1035_v54, %v671_v55  ;;  %v1085_v57 = vpop.f32.mrb[5].mxu0 }
 0x129   : > { %v674_v58 = vpop.f32.mrb[6].mxu0 }
 0x12a   : > { %v675_v59 = vadd.f32 %v1035_v54, %v674_v58  ;;  %v1086_v60 = vpop.f32.mrb[7].mxu0 }
 0x12c   : > { %v679_v28 = vld [vmem:[#allocation2] sm:$0xff]  ;;  %v678_v61 = vpack.c.bf16 %v675_v59, %v672_v56 }
 0x12d   : > { %1090 = vmatmul.mubr.msk.bf16.vlgmr.msra.gmra.mrb[4].mxu1 %vm527_vm2, %v679_v28 }
 0x12e   : > { %1094 = vmatpush3.bf16.msra.mxu0 %v678_v61 }
 0x200   : > { %v721_v37 = vpop.f32.mrb[4].mxu1 }
 0x201   : > { %v734_v38 = vsel %vm733_vm4, -1e+30, %v721_v37  ;;  %v1091_v39 = vpop.f32.mrb[5].mxu1 }
 0x202   : > { %v724_v40 = vpop.f32.mrb[6].mxu1  ;;  %v738_v41 = vsel %vm527_vm2, %v734_v38, -inf }
 0x203   : > { %v735_v42 = vsel %vm733_vm4, -1e+30, %v724_v40  ;;  %739 = vmax.xlane.f32.xlu0 %v738_v41  ;;  %v1092_v43 = vpop.f32.mrb[7].mxu1 }
 0x204   : > { %v741_v44 = vsel %vm527_vm2, %v735_v42, -inf }
 0x207   : > { %742 = vmax.xlane.f32.xlu0 %v741_v44 }
 0x290   : > { %v740_v47 = vpop.xlane.xlu0 %739 }
 0x291   : > { %v744_v48 = vmax.f32 %v736_v46, %v740_v47 }
 0x293   : > { %v746_v50 = vsub.f32 %v736_v46, %v744_v48  ;;  %846 = vst.msk [vmem:[#allocation3] sm:$0xff] %vm529_vm3, %v744_v48  ;;  %754 = vperm.xlu1 %1169, %v744_v48  }
 0x294   : > { %v743_v51 = vpop.xlane.xlu0 %742 }
 0x295   : > { %v745_v52 = vmax.f32 %v737_v49, %v743_v51  ;;  %v748_v10 = vmul.f32 1.442695, %v746_v50 }
 0x297   : > { %v747_v53 = vsub.f32 %v737_v49, %v745_v52  ;;  %847 = vst.msk [vmem:[#allocation3 + $0x8] sm:$0xff] %vm529_vm3, %v745_v52  ;;  %759 = vperm.xlu1 %1169, %v745_v52  }
 0x299   : > { %v750_v9 = vmul.f32 1.442695, %v747_v53 }
 0x312   : > { %v755_v62 = vpop.permute.xlu1 %754 }
 0x313   : > { %v762_v63 = vsub.f32 %v734_v38, %v755_v62 }
 0x315   : > { %v764_v0 = vmul.f32 1.442695, %v762_v63 }
 0x316   : > { %v760_v1 = vpop.permute.xlu1 %759 }
 0x317   : > { %1177 = vpow2.f32 %v764_v0  ;;  %v763_v2 = vsub.f32 %v735_v42, %v760_v1 }
 0x319   : > { %v766_v3 = vmul.f32 1.442695, %v763_v2 }
 0x31b   : > { %1179 = vpow2.f32 %v766_v3 }
 0x31c   : > { %1181 = vpow2.f32 %v750_v9 }
 0x31d   : > { %1183 = vpow2.f32 %v748_v10 }
 0x321   : > { %v1178_v4 = vpop.eup %1177 }
 0x322   : > { %v772_v5 = vsel %vm527_vm2, %v1178_v4, 0.0 }
 0x323   : > { %773 = vadd.xlane.f32.xlu0 %v772_v5 }
 0x325   : > { %v1180_v6 = vpop.eup %1179 }
 0x326   : > { %v775_v7 = vsel %vm527_vm2, %v1180_v6, 0.0  ;;  %v797_v8 = vpack.c.bf16 %v1180_v6, %v1178_v4  ;;  %v1182_v11 = vpop.eup %1181 }
 0x327   : > { %776 = vadd.xlane.f32.xlu1 %v775_v7  ;;  %v1184_v12 = vpop.eup %1183  ;;  %v771_v18 = vmul.f32 %v1182_v11, %v769_v16 }
 0x328   : > { %1096 = vmatmul.mubr.msk.bf16.vlgmr.msra.gmra.mrb[8].mxu0 %vm527_vm2, %v797_v8  ;;  %v770_v14 = vmul.f32 %v1184_v12, %v768_v13 }
 0x338   : > { %792 = vperm.xlu1 %1169, %v1182_v11  }
 0x339   : > { %787 = vperm.xlu0 %1170, %v1184_v12  }
 0x3b0   : > { %v774_v15 = vpop.xlane.xlu0 %773 }
 0x3b1   : > { %v778_v17 = vadd.f32 %v774_v15, %v770_v14 }
 0x3b3   : > { %781 = vst.msk [vmem:[#allocation4] sm:$0xff] %vm529_vm3, %v778_v17 }
 0x3b4   : > { %v777_v19 = vpop.xlane.xlu1 %776 }
 0x3b5   : > { %v779_v20 = vadd.f32 %v777_v19, %v771_v18 }
 0x3b7   : > { %782 = vst.msk [vmem:[#allocation4 + $0x8] sm:$0xff] %vm529_vm3, %v779_v20 }
 0x3b8   : > { %v788_v26 = vpop.permute.xlu0 %787  ;;  %v793_v28 = vpop.permute.xlu1 %792 }
 0x3b9   : > { %v795_v29 = vmul.f32 %v788_v26, %v783_v25  ;;  %v796_v31 = vmul.f32 %v793_v28, %v784_v27 }
 0x3ba   : > { %v851_v21 = vld [vmem:[#allocation4] sm:$0xff] }
 0x3bb   : > { %1185 = vrcp.f32 %v851_v21 }
 0x3be   : > { %v852_v22 = vld [vmem:[#allocation4 + $0x8] sm:$0xff] }
 0x3bf   : > { %1187 = vrcp.f32 %v852_v22 }
 0x3c5   : > { %v1186_v23 = vpop.eup %1185 }
 0x3c6   : > { %859 = vperm.xlu0 %1170, %v1186_v23  }
 0x3c9   : > { %v1188_v24 = vpop.eup %1187 }
 0x3ca   : > { %864 = vperm.xlu0 %1170, %v1188_v24  }
 0x3fb   : > { %v835_v30 = vpop.f32.mrb[8].mxu0 }
 0x3fc   : > { %v842_v32 = vadd.f32 %v835_v30, %v795_v29  ;;  %v1097_v33 = vpop.f32.mrb[9].mxu0 }
 0x3fd   : > { %v838_v34 = vpop.f32.mrb[10].mxu0 }
 0x3fe   : > { %844 = vst.msk [vmem:[#allocation5] sm:$0xff] %vm527_vm2, %v842_v32  ;;  %v843_v35 = vadd.f32 %v838_v34, %v796_v31  ;;  %v1098_v36 = vpop.f32.mrb[11].mxu0 }
 0x400   : > { %845 = vst.msk [vmem:[#allocation5 + $0x8] sm:$0xff] %vm527_vm2, %v843_v35 }
 0x405   : > { %v855_v38 = vld [vmem:[#allocation5] sm:$0xff] }
 0x407   : > { %v856_v41 = vld [vmem:[#allocation5 + $0x8] sm:$0xff] }
 0x445   : > { %v860_v37 = vpop.permute.xlu0 %859 }
 0x446   : > { %v867_v39 = vmul.f32 %v860_v37, %v855_v38 }
 0x448   : > { %869 = vst.msk [vmem:[%s427_s19] sm:$0xff] %vm527_vm2, %v867_v39 }
 0x449   : > { %v865_v40 = vpop.permute.xlu0 %864 }
 0x44a   : > { %v868_v42 = vmul.f32 %v865_v40, %v856_v41 }
 0x44c   : > { %870 = vst.msk [vmem:[%s427_s19 + $0x8] sm:$0xff] %vm527_vm2, %v868_v42 }
 0x44d   : > { %1232 = shalt.err (!%p1229_p4)
}
 0x44e   : > { %s1233_s21 = scalar_lea.hbm %s1578_s11, 256  ;;  %s1237_s29 = scalar_lea.hbm %s1637_s9, 512 }
 0x44f   : > { %p1234_p7 = scmp.ne.s32.totalorder %s1578_s11, %s1233_s21  ;;  %p1238_p1 = scmp.lt.u32.totalorder %s1578_s11, %s1637_s9 }
 0x450   : > { %p1239_p3 = scmp.lt.u32.totalorder %s1237_s29, %s1233_s21  ;;  %p1241_p8 = scmp.lt.u32.totalorder %s1233_s21, %s1578_s11 }
 0x451   : > { %p1235_p10 = pnand %p1234_p7, %p1656_p11 }
 0x452   : > { %p1240_p9 = por %p1239_p3, %p1238_p1 }
 0x453   : > { %p1236_p12 = pneg %p1235_p10 }
 0x454   : > { %p1242_p0 = por %p1241_p8, %p1240_p9 }
 0x456   : > { %p1243_p6 = pnand %p1242_p0, %p1236_p12 }
 0x458   : > { %1246 = shalt.err (!%p1243_p6)
}
 0x459   : > { %s1311_s17 = smov 128   ;;  %s1312_s18 = smov 8  }
 0x45a   : > { %1101 = dma.vmem_to_hbm [thread:$0]  (%p1656_p11), %s1572_s26, 256, %s1578_s11, %s872_s13, %s1311_s17, %s1311_s17, %s1312_s18  }
 0x45b PF: > { %s902_s2 = sand.u32 1, %s1281_s30   ;;  %p1657_p13 = scmp.ne.s32.totalorder %s1651_s24, 0 }
 0x45c   : > { %p1658_p2 = scmp.ge.s32.totalorder %s1301_s14, 2  ;;  %s903_s23 = scalar_lea.sflag [#allocation8], %s902_s2 }
 0x45e   : > { %p1108_p5 = pnand %p1658_p2, %p1657_p13 }
 0x460   : > { %1276 = dma.done.wait (!%p1108_p5), %s903_s23, 256  }
 0x461   : > { %1278 = vsyncadd (!%p1108_p5), %s903_s23, 4294967040  ;;  %s25_s14 = sadd.s32 1, %s1301_s14   ;;  %s1659_s12 = sld [smem:[#allocation12_spill]] }
 0x462   : > { %p22_p4 = scmp.ge.s32.totalorder %s25_s14, 4   ;;  %s1660_s11 = sld [smem:[#allocation15_spill]] }
 0x463   : > { %s1661_s22 = sld [smem:[#allocation13_spill]]  ;;  %s1662_s13 = sld [smem:[#allocation14_spill]] }
 0x464   : > { %s1663_s30 = smov %s1285_s10  ;;  %24 = sbr.rel (!%p22_p4) target bundleno = 8 (0x8), region = 115 }
 0x467   : > { %s1664_s10 = smov %s1659_s12 }
 0x469   : > { %s1665_s12 = smov %s1661_s22 }
 0x46b   :  { %908 = vsyncpa [#allocation7], 1 }
 0x46c   :  { %910 = vsyncpa [#allocation7 + $0x1], 1 }
 0x46d   :  { %911 = vsyncpa [#allocation8], 1 }
 0x46e   :  { %913 = vsyncpa [#allocation8 + $0x1], 1 }

</bundles_post_ra>
